<compile_context>
chip_gen: v6e
topology: v6e:2x2x1
jax: 0.10.0
libtpu: 0.0.40
codegen_flags: <defaults>
</compile_context>

<pallas_src>
import functools

import jax
import jax.numpy as jnp
from jax.experimental import pallas as pl
from jax.experimental.pallas import tpu as pltpu


def _round_up(n, m):
    return ((n + m - 1) // m) * m


def _conv_gemm_kernel(p_ref, w_ref, b_ref, o_ref):
    """One grid step: (tile_m, K) @ (K, Cout) on the MXU + fused bias epilogue."""
    acc = jnp.dot(p_ref[...], w_ref[...], preferred_element_type=jnp.float32)
    o_ref[...] = (acc + b_ref[...].astype(jnp.float32)).astype(o_ref.dtype)


def _im2col_nhwc(x_nhwc, kh_size, kw_size, stride, padding):
    """Wrapper-side patch extraction (layout plumbing, not compute).

    Returns (patches[B*OH*OW, KH*KW*Cin], OH, OW) with patch-feature ordering
    (kh, kw, cin), matching the weight reshape below.
    """
    B, H, W, Cin = x_nhwc.shape
    xp = jnp.pad(x_nhwc, ((0, 0), (padding, padding), (padding, padding), (0, 0)))
    Hp, Wp = H + 2 * padding, W + 2 * padding
    OH = (Hp - kh_size) // stride + 1
    OW = (Wp - kw_size) // stride + 1
    slabs = []
    for kh in range(kh_size):
        for kw in range(kw_size):
            slab = xp[:, kh: kh + (OH - 1) * stride + 1: stride,
                      kw: kw + (OW - 1) * stride + 1: stride, :]   # (B, OH, OW, Cin)
            slabs.append(slab)
    patches = jnp.concatenate(slabs, axis=-1)                      # (B, OH, OW, KH*KW*Cin)
    return patches.reshape(B * OH * OW, kh_size * kw_size * Cin), OH, OW


def conv_layer(x, weight, bias, *, stride, padding, tile_m=256):
    """Forward of ConvLayer: y = Conv2d(x) with PyTorch NCHW / OIHW layouts."""
    B, Cin, H, W = x.shape
    Cout, Cin_w, KH, KW = weight.shape
    assert Cin == Cin_w, "channel mismatch"

    # ---- wrapper-side layout plumbing ------------------------------------
    x_nhwc = jnp.transpose(x, (0, 2, 3, 1))                         # channels -> lanes
    patches, OH, OW = _im2col_nhwc(x_nhwc, KH, KW, stride, padding)
    M, K = patches.shape
    # (Cout, Cin, KH, KW) -> (KH, KW, Cin, Cout) -> (K, Cout), matching (kh, kw, cin).
    w_mat = jnp.transpose(weight, (2, 3, 1, 0)).reshape(K, Cout)
    b_row = bias.reshape(1, Cout)

    # Pick the largest M tile <= tile_m, keep it a multiple of 8 (sublane), and pad M
    # so every grid step sees a full block (no masked partial tiles).
    tm = min(tile_m, _round_up(M, 8))
    Mp = _round_up(M, tm)
    if Mp != M:
        patches = jnp.pad(patches, ((0, Mp - M), (0, 0)))

    out_flat = pl.pallas_call(
        _conv_gemm_kernel,
        out_shape=jax.ShapeDtypeStruct((Mp, Cout), x.dtype),
        grid=(Mp // tm,),
        in_specs=[
            pl.BlockSpec((tm, K), lambda i: (i, 0)),        # patches tile
            pl.BlockSpec((K, Cout), lambda i: (0, 0)),      # weight (resident)
            pl.BlockSpec((1, Cout), lambda i: (0, 0)),      # bias   (resident)
        ],
        out_specs=pl.BlockSpec((tm, Cout), lambda i: (i, 0)),
        compiler_params=pltpu.CompilerParams(
            dimension_semantics=("parallel",)),
    )(patches, w_mat, b_row)

    out = out_flat[:M].reshape(B, OH, OW, Cout)
    return jnp.transpose(out, (0, 3, 1, 2))                         # back to NCHW


def conv_layer_ref(x, weight, bias, *, stride, padding):
    """Pure-JAX reference, identical to torch.nn.Conv2d forward."""
    y = jax.lax.conv_general_dilated(
        x, weight, window_strides=(stride, stride),
        padding=[(padding, padding), (padding, padding)],
        dimension_numbers=("NCHW", "OIHW", "NCHW"))
    return y + bias.reshape(1, -1, 1, 1)


def _run_case(key, B, Cin, H, W, Cout, ksz, stride, padding):
    kx, kw, kb = jax.random.split(key, 3)
    x = jax.random.normal(kx, (B, Cin, H, W), dtype=jnp.float32)
    fan_in = Cin * ksz * ksz
    bound = float(fan_in) ** -0.5                                   # Conv2d default init range
    weight = jax.random.uniform(kw, (Cout, Cin, ksz, ksz), jnp.float32, -bound, bound)
    bias = jax.random.uniform(kb, (Cout,), jnp.float32, -bound, bound)

    out = conv_layer(x, weight, bias, stride=stride, padding=padding)
    out = jax.block_until_ready(out)
    ref = conv_layer_ref(x, weight, bias, stride=stride, padding=padding)

    assert out.shape == ref.shape, (out.shape, ref.shape)
    assert jnp.allclose(out, ref, atol=1e-4, rtol=1e-4), "mismatch vs reference"
    return out


if __name__ == "__main__":
    key = jax.random.PRNGKey(0)
    k1, k2 = jax.random.split(key)

    # Small shapes consistent with the module: B=2, Cin=4, 16x16 spatial, 3x3 conv.
    _run_case(k1, B=2, Cin=4, H=16, W=16, Cout=8, ksz=3, stride=1, padding=1)
    # Strided / unpadded case (exercises the non-multiple-of-tile M path).
    _run_case(k2, B=2, Cin=4, H=16, W=16, Cout=8, ksz=3, stride=2, padding=0)

    print("KERNEL_OK")
</pallas_src>

<mosaic_0001>
module attributes {stable_mosaic.version = 11 : i64} {
  func.func @_conv_gemm_kernel(%arg0: i32, %arg1: memref<256x36xf32, #tpu.memory_space<vmem>>, %arg2: memref<36x8xf32, #tpu.memory_space<vmem>>, %arg3: memref<1x8xf32, #tpu.memory_space<vmem>>, %arg4: memref<256x8xf32, #tpu.memory_space<vmem>>) attributes {dimension_semantics = [#tpu.dimension_semantics<parallel>], iteration_bounds = array<i64: 2>, scalar_prefetch = 0 : i64, scratch_operands = 0 : i64, tpu.core_type = #tpu.core_type<tc>, window_params = [{transform_indices = @transform_0, window_bounds = array<i64: 256, 36>}, {pipeline_mode = #tpu.pipeline_mode<synchronous>, transform_indices = @transform_1, window_bounds = array<i64: 36, 8>}, {pipeline_mode = #tpu.pipeline_mode<synchronous>, transform_indices = @transform_2, window_bounds = array<i64: 1, 8>}, {transform_indices = @transform_3, window_bounds = array<i64: 256, 8>}]} {
    %c0 = arith.constant 0 : index
    %c0_0 = arith.constant 0 : index
    %0 = vector.load %arg1[%c0, %c0_0] : memref<256x36xf32, #tpu.memory_space<vmem>>, vector<256x36xf32>
    %c0_1 = arith.constant 0 : index
    %c0_2 = arith.constant 0 : index
    %1 = vector.load %arg2[%c0_1, %c0_2] : memref<36x8xf32, #tpu.memory_space<vmem>>, vector<36x8xf32>
    %cst = arith.constant dense<0.000000e+00> : vector<256x8xf32>
    %2 = tpu.matmul %0, %1, %cst {dimension_numbers = #tpu.dot_dimension_numbers<[1], [0], [0], [1], [0, 0, 1, 1], [], []>} : vector<256x36xf32>, vector<36x8xf32>, vector<256x8xf32> -> vector<256x8xf32>
    %c0_3 = arith.constant 0 : index
    %c0_4 = arith.constant 0 : index
    %3 = vector.load %arg3[%c0_3, %c0_4] : memref<1x8xf32, #tpu.memory_space<vmem>>, vector<1x8xf32>
    %4 = vector.broadcast %3 : vector<1x8xf32> to vector<256x8xf32>
    %5 = arith.addf %2, %4 : vector<256x8xf32>
    %c0_5 = arith.constant 0 : index
    %c0_6 = arith.constant 0 : index
    %6 = vector.load %arg4[%c0_5, %c0_6] : memref<256x8xf32, #tpu.memory_space<vmem>>, vector<256x8xf32>
    tpu.vector_store %arg4[%c0_5, %c0_6], %5 {strides = array<i32>} : memref<256x8xf32, #tpu.memory_space<vmem>>, vector<256x8xf32>,
    return
  }
  func.func @transform_0(%arg0: i32) -> (i32, i32) {
    %c0_i32 = arith.constant 0 : i32
    %c0_i32_0 = arith.constant 0 : i32
    return %arg0, %c0_i32 : i32, i32
  }
  func.func @transform_1(%arg0: i32) -> (i32, i32) {
    %c0_i32 = arith.constant 0 : i32
    %c0_i32_0 = arith.constant 0 : i32
    %c0_i32_1 = arith.constant 0 : i32
    return %c0_i32, %c0_i32_0 : i32, i32
  }
  func.func @transform_2(%arg0: i32) -> (i32, i32) {
    %c0_i32 = arith.constant 0 : i32
    %c0_i32_0 = arith.constant 0 : i32
    %c0_i32_1 = arith.constant 0 : i32
    return %c0_i32, %c0_i32_0 : i32, i32
  }
  func.func @transform_3(%arg0: i32) -> (i32, i32) {
    %c0_i32 = arith.constant 0 : i32
    %c0_i32_0 = arith.constant 0 : i32
    return %arg0, %c0_i32 : i32, i32
  }
}

</mosaic_0001>

<bundles_post_ra>
// kernel: tpu_custom_call.1
= control target key start
LH: loop header
LB: loop body
LE: loop exit
PB: predicated region body
PF: predicated region fallthrough
CT: control target
= control target key end

     0   :  { %s819_s12 = smov 0   ;;  %s1027_s0 = inlined_call_operand.vmem [shape: f32[512,36], index: 0, kind: input, shape index: {}]   ;;  %s1028_s1 = inlined_call_operand.vmem [shape: f32[36,8], index: 1, kind: input, shape index: {}]   ;;  %s1029_s2 = inlined_call_operand.vmem [shape: f32[1,8], index: 2, kind: input, shape index: {}]   ;;  %s1030_s3 = inlined_call_operand.vmem [shape: f32[512,8], index: 3, kind: output, shape index: {}]  }
   0x1 LB: > { %s633_s13 = sadd.s32 4294967295, %s797_s12   ;;  %p637_p0 = scmp.ge.s32.totalorder %s797_s12, 1  ;;  %s797_s12 = sphi %s819_s12, %s13_s12  }
   0x2   : > { %p138_p1 = scmp.lt.s32.totalorder %s797_s12, 3 }
   0x4   : > { %p139_p2 = pnand %p637_p0, %p138_p1 }
   0x5   : > { %s638_s18 = sshll.u32 (!%p139_p2), %s633_s13, 5 }
   0x6   : > { %142 = sbr.rel (%p139_p2) target bundleno = 249 (0xf9), region = 32  ;;  %p163_p3 = scmp.lt.s32.totalorder (!%p139_p2), %s638_s18, 63 }
   0xb   : > { %v210_v0 = vld [vmem:[%s1028_s1 + $0x20] sm:$0xf]  ;;  %vm315_vm0 = vcmask 1043456   ;;  %v209_v1 = vld [vmem:[%s1028_s1 + $0x18] sm:$0xff]  ;;  %v208_v2 = vld [vmem:[%s1028_s1 + $0x10] sm:$0xff]  ;;  %s1032_s18 = smov (!%p163_p3, %s638_s18), 63 }
   0xc   : > { %715 = vmatprep.subr.msk.mxu0 %vm315_vm0, %v210_v0  ;;  %773 = vmatprep.subr.msk.mxu1 %vm315_vm0, %v210_v0  ;;  %v207_v3 = vld [vmem:[%s1028_s1 + $0x8] sm:$0xff]  ;;  %s639_s23 = sshll.u32 %s1032_s18, 3  ;;  %v206_v4 = vld [vmem:[%s1028_s1] sm:$0xff]  ;;  %vm218_vm1 = vcmask 293888   ;;  %vm544_vm2 = vcmask 64512  }
   0xd   : > { %716 = vmatpush3.msk.msra.mxu0 %vm315_vm0, %v210_v0  ;;  %778 = vmatpush3.msk.msra.mxu1 %vm315_vm0, %v210_v0  ;;  %s850_s28 = scalar_lea.vmem %s1027_s0, %s639_s23  ;;  %v919_v37 = vld [vmem:[%s1029_s2] ss:$0 sm:$0xff]  ;;  %s926_s6 = scalar_lea.vmem %s1030_s3, %s639_s23 }
   0xe   : > { %717 = vmatprep.subr.mxu0 %v209_v1  ;;  %774 = vmatprep.subr.mxu1 %v209_v1  ;;  %v174_v5 = vld [vmem:[%s850_s28] sm:$0xff]  ;;  %v175_v7 = vld [vmem:[%s850_s28 + $0x8] sm:$0xff]  ;;  %v176_v9 = vld [vmem:[%s850_s28 + $0x10] sm:$0xff] }
   0xf   : > { %718 = vmatpush3.msra.mxu0 %v209_v1  ;;  %779 = vmatpush3.msra.mxu1 %v209_v1  ;;  %v190_v6 = vld [vmem:[%s850_s28 + $0x80] sm:$0xff]  ;;  %v191_v8 = vld [vmem:[%s850_s28 + $0x88] sm:$0xff]  ;;  %v192_v10 = vld [vmem:[%s850_s28 + $0x90] sm:$0xff] }
  0x10   : > { %719 = vmatprep.subr.mxu0 %v208_v2  ;;  %775 = vmatprep.subr.mxu1 %v208_v2  ;;  %v177_v11 = vld [vmem:[%s850_s28 + $0x18] sm:$0xff]  ;;  %v178_v13 = vld [vmem:[%s850_s28 + $0x20] sm:$0xff]  ;;  %v179_v15 = vld [vmem:[%s850_s28 + $0x28] sm:$0xff] }
  0x11   : > { %720 = vmatpush3.msra.mxu0 %v208_v2  ;;  %780 = vmatpush3.msra.mxu1 %v208_v2  ;;  %v193_v12 = vld [vmem:[%s850_s28 + $0x98] sm:$0xff]  ;;  %v194_v14 = vld [vmem:[%s850_s28 + $0xa0] sm:$0xff]  ;;  %v195_v16 = vld [vmem:[%s850_s28 + $0xa8] sm:$0xff] }
  0x12   : > { %721 = vmatprep.subr.mxu0 %v207_v3  ;;  %776 = vmatprep.subr.mxu1 %v207_v3  ;;  %v180_v17 = vld [vmem:[%s850_s28 + $0x30] sm:$0xff]  ;;  %v181_v19 = vld [vmem:[%s850_s28 + $0x38] sm:$0xff]  ;;  %v182_v21 = vld [vmem:[%s850_s28 + $0x40] sm:$0xff] }
  0x13   : > { %722 = vmatpush3.msra.mxu0 %v207_v3  ;;  %781 = vmatpush3.msra.mxu1 %v207_v3  ;;  %v196_v18 = vld [vmem:[%s850_s28 + $0xb0] sm:$0xff]  ;;  %v197_v20 = vld [vmem:[%s850_s28 + $0xb8] sm:$0xff]  ;;  %v198_v22 = vld [vmem:[%s850_s28 + $0xc0] sm:$0xff] }
  0x14   : > { %723 = vmatprep.subr.mxu0 %v206_v4  ;;  %777 = vmatprep.subr.mxu1 %v206_v4  ;;  %v183_v23 = vld [vmem:[%s850_s28 + $0x48] sm:$0xff]  ;;  %v184_v25 = vld [vmem:[%s850_s28 + $0x50] sm:$0xff]  ;;  %v185_v27 = vld [vmem:[%s850_s28 + $0x58] sm:$0xff] }
  0x15   : > { %724 = vmatpush3.msra.mxu0 %v206_v4  ;;  %782 = vmatpush3.msra.mxu1 %v206_v4  ;;  %v199_v24 = vld [vmem:[%s850_s28 + $0xc8] sm:$0xff]  ;;  %v200_v26 = vld [vmem:[%s850_s28 + $0xd0] sm:$0xff]  ;;  %v201_v28 = vld [vmem:[%s850_s28 + $0xd8] sm:$0xff] }
  0x16   : > { %725 = vmatprep.mubr.msk.f32.mxu0 %vm218_vm1, %v174_v5  ;;  %749 = vmatprep.mubr.msk.f32.mxu1 %vm218_vm1, %v190_v6  ;;  %v186_v29 = vld [vmem:[%s850_s28 + $0x60] sm:$0xff]  ;;  %v187_v31 = vld [vmem:[%s850_s28 + $0x68] sm:$0xff]  ;;  %v188_v33 = vld [vmem:[%s850_s28 + $0x70] sm:$0xff] }
  0x17   : > { %726 = vmatmul.mubr.msk.f32.vlgmr.msra.gmra.mxu0 %vm218_vm1, %v175_v7  ;;  %750 = vmatmul.mubr.msk.f32.vlgmr.msra.gmra.mxu1 %vm218_vm1, %v191_v8  ;;  %v202_v30 = vld [vmem:[%s850_s28 + $0xe0] sm:$0xff]  ;;  %v203_v32 = vld [vmem:[%s850_s28 + $0xe8] sm:$0xff]  ;;  %v204_v34 = vld [vmem:[%s850_s28 + $0xf0] sm:$0xff] }
  0x18   : > { %728 = vmatprep.mubr.msk.f32.mxu0 %vm218_vm1, %v176_v9  ;;  %752 = vmatprep.mubr.msk.f32.mxu1 %vm218_vm1, %v192_v10  ;;  %v189_v35 = vld [vmem:[%s850_s28 + $0x78] sm:$0xff] }
  0x19   : > { %v205_v36 = vld [vmem:[%s850_s28 + $0xf8] sm:$0xff] }
  0x1b   : > { %729 = vmatmul.mubr.msk.f32.gmra.mxu0 %vm218_vm1, %v177_v11  ;;  %753 = vmatmul.mubr.msk.f32.gmra.mxu1 %vm218_vm1, %v193_v12 }
  0x1c   : > { %731 = vmatprep.mubr.msk.f32.mxu0 %vm218_vm1, %v178_v13  ;;  %755 = vmatprep.mubr.msk.f32.mxu1 %vm218_vm1, %v194_v14 }
  0x1f   : > { %732 = vmatmul.mubr.msk.f32.gmra.mxu0 %vm218_vm1, %v179_v15  ;;  %756 = vmatmul.mubr.msk.f32.gmra.mxu1 %vm218_vm1, %v195_v16 }
  0x20   : > { %734 = vmatprep.mubr.msk.f32.mxu0 %vm218_vm1, %v180_v17  ;;  %758 = vmatprep.mubr.msk.f32.mxu1 %vm218_vm1, %v196_v18 }
  0x23   : > { %735 = vmatmul.mubr.msk.f32.gmra.mxu0 %vm218_vm1, %v181_v19  ;;  %759 = vmatmul.mubr.msk.f32.gmra.mxu1 %vm218_vm1, %v197_v20 }
  0x24   : > { %737 = vmatprep.mubr.msk.f32.mxu0 %vm218_vm1, %v182_v21  ;;  %761 = vmatprep.mubr.msk.f32.mxu1 %vm218_vm1, %v198_v22 }
  0x27   : > { %738 = vmatmul.mubr.msk.f32.gmra.mxu0 %vm218_vm1, %v183_v23  ;;  %762 = vmatmul.mubr.msk.f32.gmra.mxu1 %vm218_vm1, %v199_v24 }
  0x28   : > { %740 = vmatprep.mubr.msk.f32.mxu0 %vm218_vm1, %v184_v25  ;;  %764 = vmatprep.mubr.msk.f32.mxu1 %vm218_vm1, %v200_v26 }
  0x2b   : > { %741 = vmatmul.mubr.msk.f32.gmra.mxu0 %vm218_vm1, %v185_v27  ;;  %765 = vmatmul.mubr.msk.f32.gmra.mxu1 %vm218_vm1, %v201_v28 }
  0x2c   : > { %743 = vmatprep.mubr.msk.f32.mxu0 %vm218_vm1, %v186_v29  ;;  %767 = vmatprep.mubr.msk.f32.mxu1 %vm218_vm1, %v202_v30 }
  0x2f   : > { %744 = vmatmul.mubr.msk.f32.gmra.mxu0 %vm218_vm1, %v187_v31  ;;  %768 = vmatmul.mubr.msk.f32.gmra.mxu1 %vm218_vm1, %v203_v32 }
  0x30   : > { %746 = vmatprep.mubr.msk.f32.mxu0 %vm218_vm1, %v188_v33  ;;  %770 = vmatprep.mubr.msk.f32.mxu1 %vm218_vm1, %v204_v34 }
  0x33   : > { %747 = vmatmul.mubr.msk.f32.gmra.mxu0 %vm218_vm1, %v189_v35  ;;  %771 = vmatmul.mubr.msk.f32.gmra.mxu1 %vm218_vm1, %v205_v36 }
  0xd7   : > { %v727_v38 = vpop.f32.mrf.mxu0  ;;  %v751_v39 = vpop.f32.mrf.mxu1 }
  0xd8   : > { %v391_v40 = vadd.f32 %v727_v38, %v919_v37  ;;  %v471_v41 = vadd.f32 %v751_v39, %v919_v37 }
  0xd9   : > { %v385_v42 = vpop.f32.mrf.mxu0  ;;  %v465_v43 = vpop.f32.mrf.mxu1 }
  0xda   : > { %546 = vst.msk [vmem:[%s926_s6 + $0x8] sm:$0xff] %vm544_vm2, %v391_v40  ;;  %562 = vst.msk [vmem:[%s926_s6 + $0x88] sm:$0xff] %vm544_vm2, %v471_v41  ;;  %v386_v44 = vadd.f32 %v919_v37, %v385_v42  ;;  %v466_v45 = vadd.f32 %v919_v37, %v465_v43 }
  0xdb   : > { %v730_v46 = vpop.f32.mrf.mxu0  ;;  %v754_v47 = vpop.f32.mrf.mxu1 }
  0xdc   : > { %545 = vst.msk [vmem:[%s926_s6] sm:$0xff] %vm544_vm2, %v386_v44  ;;  %561 = vst.msk [vmem:[%s926_s6 + $0x80] sm:$0xff] %vm544_vm2, %v466_v45  ;;  %v401_v48 = vadd.f32 %v730_v46, %v919_v37  ;;  %v481_v49 = vadd.f32 %v754_v47, %v919_v37 }
  0xdd   : > { %v395_v50 = vpop.f32.mrf.mxu0  ;;  %v475_v51 = vpop.f32.mrf.mxu1 }
  0xde   : > { %548 = vst.msk [vmem:[%s926_s6 + $0x18] sm:$0xff] %vm544_vm2, %v401_v48  ;;  %564 = vst.msk [vmem:[%s926_s6 + $0x98] sm:$0xff] %vm544_vm2, %v481_v49  ;;  %v396_v52 = vadd.f32 %v919_v37, %v395_v50  ;;  %v476_v53 = vadd.f32 %v919_v37, %v475_v51 }
  0xdf   : > { %v733_v54 = vpop.f32.mrf.mxu0  ;;  %v757_v55 = vpop.f32.mrf.mxu1 }
  0xe0   : > { %547 = vst.msk [vmem:[%s926_s6 + $0x10] sm:$0xff] %vm544_vm2, %v396_v52  ;;  %563 = vst.msk [vmem:[%s926_s6 + $0x90] sm:$0xff] %vm544_vm2, %v476_v53  ;;  %v411_v56 = vadd.f32 %v733_v54, %v919_v37  ;;  %v491_v57 = vadd.f32 %v757_v55, %v919_v37 }
  0xe1   : > { %v405_v58 = vpop.f32.mrf.mxu0  ;;  %v485_v59 = vpop.f32.mrf.mxu1 }
  0xe2   : > { %550 = vst.msk [vmem:[%s926_s6 + $0x28] sm:$0xff] %vm544_vm2, %v411_v56  ;;  %566 = vst.msk [vmem:[%s926_s6 + $0xa8] sm:$0xff] %vm544_vm2, %v491_v57  ;;  %v406_v60 = vadd.f32 %v919_v37, %v405_v58  ;;  %v486_v61 = vadd.f32 %v919_v37, %v485_v59 }
  0xe3   : > { %v736_v62 = vpop.f32.mrf.mxu0  ;;  %v760_v63 = vpop.f32.mrf.mxu1 }
  0xe4   : > { %549 = vst.msk [vmem:[%s926_s6 + $0x20] sm:$0xff] %vm544_vm2, %v406_v60  ;;  %565 = vst.msk [vmem:[%s926_s6 + $0xa0] sm:$0xff] %vm544_vm2, %v486_v61  ;;  %v421_v0 = vadd.f32 %v736_v62, %v919_v37  ;;  %v501_v1 = vadd.f32 %v760_v63, %v919_v37 }
  0xe5   : > { %v415_v2 = vpop.f32.mrf.mxu0  ;;  %v495_v3 = vpop.f32.mrf.mxu1 }
  0xe6   : > { %552 = vst.msk [vmem:[%s926_s6 + $0x38] sm:$0xff] %vm544_vm2, %v421_v0  ;;  %568 = vst.msk [vmem:[%s926_s6 + $0xb8] sm:$0xff] %vm544_vm2, %v501_v1  ;;  %v416_v4 = vadd.f32 %v919_v37, %v415_v2  ;;  %v496_v5 = vadd.f32 %v919_v37, %v495_v3 }
  0xe7   : > { %v739_v6 = vpop.f32.mrf.mxu0  ;;  %v763_v7 = vpop.f32.mrf.mxu1 }
  0xe8   : > { %551 = vst.msk [vmem:[%s926_s6 + $0x30] sm:$0xff] %vm544_vm2, %v416_v4  ;;  %567 = vst.msk [vmem:[%s926_s6 + $0xb0] sm:$0xff] %vm544_vm2, %v496_v5  ;;  %v431_v8 = vadd.f32 %v739_v6, %v919_v37  ;;  %v511_v9 = vadd.f32 %v763_v7, %v919_v37 }
  0xe9   : > { %v425_v10 = vpop.f32.mrf.mxu0  ;;  %v505_v11 = vpop.f32.mrf.mxu1 }
  0xea   : > { %554 = vst.msk [vmem:[%s926_s6 + $0x48] sm:$0xff] %vm544_vm2, %v431_v8  ;;  %570 = vst.msk [vmem:[%s926_s6 + $0xc8] sm:$0xff] %vm544_vm2, %v511_v9  ;;  %v426_v12 = vadd.f32 %v919_v37, %v425_v10  ;;  %v506_v13 = vadd.f32 %v919_v37, %v505_v11 }
  0xeb   : > { %v742_v14 = vpop.f32.mrf.mxu0  ;;  %v766_v15 = vpop.f32.mrf.mxu1 }
  0xec   : > { %553 = vst.msk [vmem:[%s926_s6 + $0x40] sm:$0xff] %vm544_vm2, %v426_v12  ;;  %569 = vst.msk [vmem:[%s926_s6 + $0xc0] sm:$0xff] %vm544_vm2, %v506_v13  ;;  %v441_v16 = vadd.f32 %v742_v14, %v919_v37  ;;  %v521_v17 = vadd.f32 %v766_v15, %v919_v37 }
  0xed   : > { %v435_v18 = vpop.f32.mrf.mxu0  ;;  %v515_v19 = vpop.f32.mrf.mxu1 }
  0xee   : > { %556 = vst.msk [vmem:[%s926_s6 + $0x58] sm:$0xff] %vm544_vm2, %v441_v16  ;;  %572 = vst.msk [vmem:[%s926_s6 + $0xd8] sm:$0xff] %vm544_vm2, %v521_v17  ;;  %v436_v20 = vadd.f32 %v919_v37, %v435_v18  ;;  %v516_v21 = vadd.f32 %v919_v37, %v515_v19 }
  0xef   : > { %v745_v22 = vpop.f32.mrf.mxu0  ;;  %v769_v23 = vpop.f32.mrf.mxu1 }
  0xf0   : > { %555 = vst.msk [vmem:[%s926_s6 + $0x50] sm:$0xff] %vm544_vm2, %v436_v20  ;;  %571 = vst.msk [vmem:[%s926_s6 + $0xd0] sm:$0xff] %vm544_vm2, %v516_v21  ;;  %v451_v24 = vadd.f32 %v745_v22, %v919_v37  ;;  %v531_v25 = vadd.f32 %v769_v23, %v919_v37 }
  0xf1   : > { %v445_v26 = vpop.f32.mrf.mxu0  ;;  %v525_v27 = vpop.f32.mrf.mxu1 }
  0xf2   : > { %558 = vst.msk [vmem:[%s926_s6 + $0x68] sm:$0xff] %vm544_vm2, %v451_v24  ;;  %574 = vst.msk [vmem:[%s926_s6 + $0xe8] sm:$0xff] %vm544_vm2, %v531_v25  ;;  %v446_v28 = vadd.f32 %v919_v37, %v445_v26  ;;  %v526_v29 = vadd.f32 %v919_v37, %v525_v27 }
  0xf3   : > { %v748_v30 = vpop.f32.mrf.mxu0  ;;  %v772_v31 = vpop.f32.mrf.mxu1 }
  0xf4   : > { %557 = vst.msk [vmem:[%s926_s6 + $0x60] sm:$0xff] %vm544_vm2, %v446_v28  ;;  %573 = vst.msk [vmem:[%s926_s6 + $0xe0] sm:$0xff] %vm544_vm2, %v526_v29  ;;  %v461_v32 = vadd.f32 %v748_v30, %v919_v37  ;;  %v541_v33 = vadd.f32 %v772_v31, %v919_v37 }
  0xf5   : > { %v455_v34 = vpop.f32.mrf.mxu0  ;;  %v535_v35 = vpop.f32.mrf.mxu1 }
  0xf6   : > { %560 = vst.msk [vmem:[%s926_s6 + $0x78] sm:$0xff] %vm544_vm2, %v461_v32  ;;  %576 = vst.msk [vmem:[%s926_s6 + $0xf8] sm:$0xff] %vm544_vm2, %v541_v33  ;;  %v456_v36 = vadd.f32 %v919_v37, %v455_v34  ;;  %v536_v38 = vadd.f32 %v919_v37, %v535_v35 }
  0xf8   : > { %559 = vst.msk [vmem:[%s926_s6 + $0x70] sm:$0xff] %vm544_vm2, %v456_v36  ;;  %575 = vst.msk [vmem:[%s926_s6 + $0xf0] sm:$0xff] %vm544_vm2, %v536_v38 }
  0xf9 PF: > { %s13_s12 = sadd.s32 1, %s797_s12  }
  0xfa   : > { %p10_p4 = scmp.ge.s32.totalorder %s13_s12, 4  }
  0xfc   :  { %12 = sbr.rel (!%p10_p4) target bundleno = 1 (0x1), region = 62 }

</bundles_post_ra>
